<compile_context>
chip_gen: v7x
topology: tpu7x:2x2x1
jax: 0.10.0
libtpu: 0.0.40
codegen_flags: <defaults>
</compile_context>

<pallas_src>
import jax
import jax.numpy as jnp
from jax.experimental import pallas as pl
from jax.experimental.pallas import tpu as pltpu


def _round_up(n, m):
    return (n + m - 1) // m * m


def classifier_kernel(x_ref, w1_ref, b1_ref, w2_ref, b2_ref, o_ref):
    # In-kernel cast to the MXU dtype (VPU has slack; avoids a wrapper HBM pass).
    x = x_ref[...].astype(w1_ref.dtype)
    # First linear on the MXU (bf16 x bf16 -> f32 accumulate).
    h = jnp.dot(x, w1_ref[...], preferred_element_type=jnp.float32)
    # Bias + ReLU fused in one f32 VPU pass.
    h = jnp.maximum(h + b1_ref[...], 0.0)
    # Dropout: nn.Dropout is identity at inference time.
    # TODO(synk): training-mode dropout would need pltpu.prng_seed + prng_random_bits.
    # Second linear on the MXU; output stays compact (bn, C) -- no lane padding.
    out = jnp.dot(h.astype(w2_ref.dtype), w2_ref[...],
                  preferred_element_type=jnp.float32)
    o_ref[...] = (out + b2_ref[...]).astype(o_ref.dtype)


def prepare_classifier_params(w1, b1, w2, b2, *, compute_dtype=jnp.bfloat16):
    """One-time parameter prep (hoisted out of the per-call path).

    w1 : [D, H]  (PyTorch lin1.weight transposed)
    b1 : [H]
    w2 : [H, C]  (PyTorch lin2.weight transposed)
    b2 : [C]
    Pads only the hidden dim to 128 lanes (exact: padded cols/rows are zero,
    relu(0+0)=0) and casts the matmul operands to bf16. D and C stay unpadded.
    """
    D, H = w1.shape
    C = w2.shape[1]
    H_pad = _round_up(H, 128)
    w1p = jnp.zeros((D, H_pad), compute_dtype).at[:, :H].set(
        w1.astype(compute_dtype))
    b1p = jnp.zeros((1, H_pad), jnp.float32).at[0, :H].set(
        b1.astype(jnp.float32))
    w2p = jnp.zeros((H_pad, C), compute_dtype).at[:H, :].set(
        w2.astype(compute_dtype))
    b2p = b2.astype(jnp.float32).reshape(1, C)
    return w1p, b1p, w2p, b2p


def classifier_forward(x, w1p, b1p, w2p, b2p, *, block_n=2048):
    """Fused Linear -> ReLU -> (dropout: identity) -> Linear.

    x : [N, D] float (any float dtype; cast to bf16 inside the kernel)
    (w1p, b1p, w2p, b2p) from prepare_classifier_params.
    Returns logits [N, C] float32.
    """
    N, D = x.shape
    assert w1p.shape[0] == D
    H_pad = w1p.shape[1]
    C = w2p.shape[1]

    # Batch tile: big enough to amortize per-grid-step overhead, adaptive so a
    # batch slightly above a tile multiple doesn't waste a whole padded tile.
    bn = min(block_n, _round_up(max(N, 8), 8))
    N_pad = _round_up(N, bn)
    # Keep >=2 grid steps when it costs no extra padding, so v7x's two
    # TensorCores both get a share of the (parallel) batch axis.
    if N_pad // bn == 1 and N_pad >= 16:
        bn_half = _round_up(pl.cdiv(N_pad, 2), 8)
        if _round_up(N, bn_half) <= N_pad:
            bn = bn_half
            N_pad = _round_up(N, bn)
    grid = (N_pad // bn,)

    # Only touch x if the batch needs rounding up to the tile (rows of zeros;
    # exact, and sliced off below). No feature-dim padding, no dtype cast.
    xp = x if N_pad == N else jnp.pad(x, ((0, N_pad - N), (0, 0)))

    w_itemsize = jnp.dtype(w1p.dtype).itemsize
    cost = pl.CostEstimate(
        flops=2 * N_pad * H_pad * (D + C),
        transcendentals=0,
        bytes_accessed=(N_pad * D * x.dtype.itemsize        # x tiles (raw)
                        + N_pad * C * 4                     # compact f32 logits
                        + (D * H_pad + H_pad * C) * w_itemsize  # weights (resident)
                        + (H_pad + C) * 4),                 # biases
    )

    out = pl.pallas_call(
        classifier_kernel,
        out_shape=jax.ShapeDtypeStruct((N_pad, C), jnp.float32),
        grid_spec=pltpu.PrefetchScalarGridSpec(
            num_scalar_prefetch=0,
            grid=grid,
            in_specs=[
                # x tile walks the batch axis; D unpadded (block dim == array dim).
                pl.BlockSpec((bn, D), lambda i: (i, 0)),
                # Weights / biases resident in VMEM across all grid steps.
                pl.BlockSpec((D, H_pad), lambda i: (0, 0)),
                pl.BlockSpec((1, H_pad), lambda i: (0, 0)),
                pl.BlockSpec((H_pad, C), lambda i: (0, 0)),
                pl.BlockSpec((1, C), lambda i: (0, 0)),
            ],
            # Compact output block: last dim C equals the full array dim.
            out_specs=pl.BlockSpec((bn, C), lambda i: (i, 0)),
        ),
        compiler_params=pltpu.CompilerParams(
            dimension_semantics=("parallel",),
        ),
        cost_estimate=cost,
    )(xp, w1p, b1p, w2p, b2p)

    return out if N_pad == N else out[:N]


if __name__ == "__main__":
    # Small shapes consistent with Classifier(input_dim, hidden_size, n_classes).
    N, D, H, C = 16, 64, 32, 8  # batch, input_dim, hidden_size, n_classes

    key = jax.random.PRNGKey(0)
    kx, kw1, kb1, kw2, kb2 = jax.random.split(key, 5)

    x = jax.random.normal(kx, (N, D), dtype=jnp.float32)
    # Deterministic synthetic parameters (PyTorch would use kaiming-uniform).
    w1 = jax.random.normal(kw1, (D, H), dtype=jnp.float32) * 0.1
    b1 = jax.random.normal(kb1, (H,), dtype=jnp.float32) * 0.1
    w2 = jax.random.normal(kw2, (H, C), dtype=jnp.float32) * 0.1
    b2 = jax.random.normal(kb2, (C,), dtype=jnp.float32) * 0.1

    # Static-parameter prep done once, reused across forward calls.
    params = prepare_classifier_params(w1, b1, w2, b2)
    params = jax.block_until_ready(params)

    out = classifier_forward(x, *params)
    out = jax.block_until_ready(out)
    assert out.shape == (N, C)

    # Reference with the same mixed precision (bf16 matmul operands, f32 acc).
    xb, w1b, w2b = (a.astype(jnp.bfloat16) for a in (x, w1, w2))
    h_ref = jnp.maximum(
        jnp.dot(xb, w1b, preferred_element_type=jnp.float32) + b1, 0.0)
    ref = jnp.dot(h_ref.astype(jnp.bfloat16), w2b,
                  preferred_element_type=jnp.float32) + b2
    assert jnp.allclose(out, ref, atol=2e-2, rtol=2e-2), \
        float(jnp.max(jnp.abs(out - ref)))

    # Sanity vs the full-f32 reference (bf16 cast error only).
    ref32 = jnp.maximum(x @ w1 + b1, 0.0) @ w2 + b2
    assert jnp.allclose(out, ref32, atol=1e-1, rtol=1e-1), \
        float(jnp.max(jnp.abs(out - ref32)))

    print("KERNEL_OK")
</pallas_src>

<mosaic_0001>
module attributes {stable_mosaic.version = 11 : i64} {
  func.func @classifier_kernel(%arg0: i32, %arg1: memref<8x64xf32, #tpu.memory_space<vmem>>, %arg2: memref<64x128xbf16, #tpu.memory_space<vmem>>, %arg3: memref<1x128xf32, #tpu.memory_space<vmem>>, %arg4: memref<128x8xbf16, #tpu.memory_space<vmem>>, %arg5: memref<1x8xf32, #tpu.memory_space<vmem>>, %arg6: memref<8x8xf32, #tpu.memory_space<vmem>>) attributes {dimension_semantics = [#tpu.dimension_semantics<parallel>], iteration_bounds = array<i64: 2>, scalar_prefetch = 0 : i64, scratch_operands = 0 : i64, tpu.core_type = #tpu.core_type<tc>, window_params = [{transform_indices = @transform_0, window_bounds = array<i64: 8, 64>}, {pipeline_mode = #tpu.pipeline_mode<synchronous>, transform_indices = @transform_1, window_bounds = array<i64: 64, 128>}, {pipeline_mode = #tpu.pipeline_mode<synchronous>, transform_indices = @transform_2, window_bounds = array<i64: 1, 128>}, {pipeline_mode = #tpu.pipeline_mode<synchronous>, transform_indices = @transform_3, window_bounds = array<i64: 128, 8>}, {pipeline_mode = #tpu.pipeline_mode<synchronous>, transform_indices = @transform_4, window_bounds = array<i64: 1, 8>}, {transform_indices = @transform_5, window_bounds = array<i64: 8, 8>}]} {
    %c0 = arith.constant 0 : index
    %c0_0 = arith.constant 0 : index
    %0 = vector.load %arg1[%c0, %c0_0] : memref<8x64xf32, #tpu.memory_space<vmem>>, vector<8x64xf32>
    %1 = arith.truncf %0 : vector<8x64xf32> to vector<8x64xbf16>
    %c0_1 = arith.constant 0 : index
    %c0_2 = arith.constant 0 : index
    %2 = vector.load %arg2[%c0_1, %c0_2] : memref<64x128xbf16, #tpu.memory_space<vmem>>, vector<64x128xbf16>
    %cst = arith.constant dense<0.000000e+00> : vector<8x128xf32>
    %3 = tpu.matmul %1, %2, %cst {dimension_numbers = #tpu.dot_dimension_numbers<[1], [0], [0], [1], [0, 0, 1, 1], [], []>} : vector<8x64xbf16>, vector<64x128xbf16>, vector<8x128xf32> -> vector<8x128xf32>
    %c0_3 = arith.constant 0 : index
    %c0_4 = arith.constant 0 : index
    %4 = vector.load %arg3[%c0_3, %c0_4] : memref<1x128xf32, #tpu.memory_space<vmem>>, vector<1x128xf32>
    %5 = vector.broadcast %4 : vector<1x128xf32> to vector<8x128xf32>
    %6 = arith.addf %3, %5 : vector<8x128xf32>
    %cst_5 = arith.constant 0.000000e+00 : f32
    %7 = vector.broadcast %cst_5 : f32 to vector<8x128xf32>
    %8 = arith.maximumf %6, %7 : vector<8x128xf32>
    %9 = arith.truncf %8 : vector<8x128xf32> to vector<8x128xbf16>
    %c0_6 = arith.constant 0 : index
    %c0_7 = arith.constant 0 : index
    %10 = vector.load %arg4[%c0_6, %c0_7] : memref<128x8xbf16, #tpu.memory_space<vmem>>, vector<128x8xbf16>
    %cst_8 = arith.constant dense<0.000000e+00> : vector<8x8xf32>
    %11 = tpu.matmul %9, %10, %cst_8 {dimension_numbers = #tpu.dot_dimension_numbers<[1], [0], [0], [1], [0, 0, 1, 1], [], []>} : vector<8x128xbf16>, vector<128x8xbf16>, vector<8x8xf32> -> vector<8x8xf32>
    %c0_9 = arith.constant 0 : index
    %c0_10 = arith.constant 0 : index
    %12 = vector.load %arg5[%c0_9, %c0_10] : memref<1x8xf32, #tpu.memory_space<vmem>>, vector<1x8xf32>
    %13 = vector.broadcast %12 : vector<1x8xf32> to vector<8x8xf32>
    %14 = arith.addf %11, %13 : vector<8x8xf32>
    %c0_11 = arith.constant 0 : index
    %c0_12 = arith.constant 0 : index
    %15 = vector.load %arg6[%c0_11, %c0_12] : memref<8x8xf32, #tpu.memory_space<vmem>>, vector<8x8xf32>
    tpu.vector_store %arg6[%c0_11, %c0_12], %14 {strides = array<i32>} : memref<8x8xf32, #tpu.memory_space<vmem>>, vector<8x8xf32>,
    return
  }
  func.func @transform_0(%arg0: i32) -> (i32, i32) {
    %c0_i32 = arith.constant 0 : i32
    %c0_i32_0 = arith.constant 0 : i32
    return %arg0, %c0_i32 : i32, i32
  }
  func.func @transform_1(%arg0: i32) -> (i32, i32) {
    %c0_i32 = arith.constant 0 : i32
    %c0_i32_0 = arith.constant 0 : i32
    %c0_i32_1 = arith.constant 0 : i32
    return %c0_i32, %c0_i32_0 : i32, i32
  }
  func.func @transform_2(%arg0: i32) -> (i32, i32) {
    %c0_i32 = arith.constant 0 : i32
    %c0_i32_0 = arith.constant 0 : i32
    %c0_i32_1 = arith.constant 0 : i32
    return %c0_i32, %c0_i32_0 : i32, i32
  }
  func.func @transform_3(%arg0: i32) -> (i32, i32) {
    %c0_i32 = arith.constant 0 : i32
    %c0_i32_0 = arith.constant 0 : i32
    %c0_i32_1 = arith.constant 0 : i32
    return %c0_i32, %c0_i32_0 : i32, i32
  }
  func.func @transform_4(%arg0: i32) -> (i32, i32) {
    %c0_i32 = arith.constant 0 : i32
    %c0_i32_0 = arith.constant 0 : i32
    %c0_i32_1 = arith.constant 0 : i32
    return %c0_i32, %c0_i32_0 : i32, i32
  }
  func.func @transform_5(%arg0: i32) -> (i32, i32) {
    %c0_i32 = arith.constant 0 : i32
    %c0_i32_0 = arith.constant 0 : i32
    return %arg0, %c0_i32 : i32, i32
  }
}

</mosaic_0001>

<bundles_post_ra>
// kernel: tpu_custom_call.1
= control target key start
LH: loop header
LB: loop body
LE: loop exit
PB: predicated region body
PF: predicated region fallthrough
CT: control target
= control target key end

     0   :  { %s606_s18 = smov 0   ;;  %s672_s0 = inlined_call_operand.vmem [shape: f32[16,64], index: 0, kind: input, shape index: {}]   ;;  %s673_s1 = inlined_call_operand.vmem [shape: bf16[64,128], index: 1, kind: input, shape index: {}]   ;;  %s674_s2 = inlined_call_operand.vmem [shape: f32[1,128], index: 2, kind: input, shape index: {}]   ;;  %s675_s3 = inlined_call_operand.vmem [shape: bf16[128,8], index: 3, kind: input, shape index: {}]   ;;  %s676_s4 = inlined_call_operand.vmem [shape: f32[1,8], index: 4, kind: input, shape index: {}]   ;;  %s677_s5 = inlined_call_operand.vmem [shape: f32[16,8], index: 5, kind: output, shape index: {}]  }
   0x1 LB: > { %s474_s19 = sadd.s32 4294967295, %s572_s18   ;;  %p478_p0 = scmp.ge.s32.totalorder %s572_s18, 1  ;;  %s572_s18 = sphi %s606_s18, %s15_s18  }
   0x2   : > { %p186_p1 = scmp.lt.s32.totalorder %s572_s18, 3 }
   0x4   : > { %p187_p2 = pnand %p478_p0, %p186_p1 }
   0x5   : > { %v554_v0 = vld [vmem:[%s673_s1] sm:$0xff] (!%p187_p2)   ;;  %v574_v1 = vmov (!%p187_p2), 0.0   ;;  %v555_v2 = vld [vmem:[%s673_s1 + $0x8] sm:$0xff] (!%p187_p2)   ;;  %vm575_vm0 = vmmov (!%p187_p2), 0   ;;  %p212_p3 = scmp.lt.s32.totalorder (!%p187_p2), %s474_s19, 1  ;;  %v556_v4 = vld [vmem:[%s673_s1 + $0x10] sm:$0xff] (!%p187_p2)  }
   0x6   : > { %190 = sbr.rel (%p187_p2) target bundleno = 455 (0x1c7), region = 40  ;;  %512 = vmatprep.subr.bf16.mxu0 (!%p187_p2), %v574_v1  ;;  %524 = vmatprep.subr.bf16.mxu1 (!%p187_p2), %v574_v1  ;;  %v558_v3 = vld [vmem:[%s675_s3] sm:$0xff] (!%p187_p2)   ;;  %v559_v5 = vld [vmem:[%s675_s3 + $0x8] sm:$0xff] (!%p187_p2)   ;;  %v557_v6 = vld [vmem:[%s673_s1 + $0x18] sm:$0xff] (!%p187_p2)   ;;  %vm262_vm1 = vcmask (!%p187_p2), 523264   ;;  %vm419_vm2 = vcmask (!%p187_p2), 64512  }
   0x7   : > { %513 = vmatpush3.bf16.msra.mxu0 (!%p187_p2), %v554_v0  ;;  %520 = vmatprep.mubr.msk.bf16.mxu0 (!%p187_p2), %vm575_vm0, %v574_v1  ;;  %v560_v8 = vld [vmem:[%s675_s3 + $0x10] sm:$0xff] (!%p187_p2)   ;;  %v561_v10 = vld [vmem:[%s675_s3 + $0x18] sm:$0xff] (!%p187_p2)   ;;  %v562_v11 = vld [vmem:[%s675_s3 + $0x20] sm:$0xff] (!%p187_p2)  }
   0x8   : > { %514 = vmatprep.subr.bf16.mxu0 (!%p187_p2), %v574_v1  ;;  %540 = vmatprep.mubr.msk.bf16.mxu1 (!%p187_p2), %vm575_vm0, %v574_v1  ;;  %v563_v12 = vld [vmem:[%s675_s3 + $0x28] sm:$0xff] (!%p187_p2)   ;;  %v564_v13 = vld [vmem:[%s675_s3 + $0x30] sm:$0xff] (!%p187_p2)   ;;  %v565_v14 = vld [vmem:[%s675_s3 + $0x38] sm:$0xff] (!%p187_p2)  }
   0x9   : > { %525 = vmatpush3.bf16.msra.mxu1 (!%p187_p2), %v558_v3  ;;  %v481_v15 = vld [vmem:[%s674_s2] ss:$0 sm:$0xff] (!%p187_p2) }
   0xa   : > { %526 = vmatprep.subr.bf16.mxu1 (!%p187_p2), %v574_v1  ;;  %v487_v23 = vld [vmem:[%s676_s4] ss:$0 sm:$0xff] (!%p187_p2) }
   0xb   : > { %515 = vmatpush3.bf16.msra.mxu0 (!%p187_p2), %v555_v2 }
   0xc   : > { %516 = vmatprep.subr.bf16.mxu0 (!%p187_p2), %v574_v1 }
   0xd   : > { %s679_s19 = smov (!%p212_p3, %s474_s19), 1  ;;  %527 = vmatpush3.bf16.msra.mxu1 %v559_v5 }
   0xe   : > { %s479_s28 = sshll.u32 %s679_s19, 3  ;;  %528 = vmatprep.subr.bf16.mxu1 %v574_v1 }
   0xf   : > { %s215_s8 = scalar_lea.vmem %s672_s0, %s479_s28  ;;  %517 = vmatpush3.bf16.msra.mxu0 %v556_v4  ;;  %s219_s7 = scalar_lea.vmem %s677_s5, %s479_s28 }
  0x10   : > { %v221_v7 = vld [vmem:[%s215_s8] sm:$0xff]  ;;  %518 = vmatprep.subr.bf16.mxu0 %v574_v1 }
  0x11   : > { %v222_v9 = vpack.c.bf16 %v221_v7, %v221_v7  ;;  %529 = vmatpush3.bf16.msra.mxu1 %v560_v8 }
  0x12   : > { %530 = vmatprep.subr.bf16.mxu1 %v574_v1 }
  0x13   : > { %519 = vmatpush3.bf16.msra.mxu0 %v557_v6 }
  0x15   : > { %531 = vmatpush3.bf16.msra.mxu1 %v561_v10 }
  0x16   : > { %521 = vmatmul.mubr.msk.bf16.vlgmr.msra.gmra.mrb[0].mxu0 %vm262_vm1, %v222_v9  ;;  %532 = vmatprep.subr.bf16.mxu1 %v574_v1 }
  0x19   : > { %533 = vmatpush3.bf16.msra.mxu1 %v562_v11 }
  0x1a   : > { %534 = vmatprep.subr.bf16.mxu1 %v574_v1 }
  0x1d   : > { %535 = vmatpush3.bf16.msra.mxu1 %v563_v12 }
  0x1e   : > { %536 = vmatprep.subr.bf16.mxu1 %v574_v1 }
  0x21   : > { %537 = vmatpush3.bf16.msra.mxu1 %v564_v13 }
  0x22   : > { %538 = vmatprep.subr.bf16.mxu1 %v574_v1 }
  0x25   : > { %539 = vmatpush3.bf16.msra.mxu1 %v565_v14 }
  0xe9   : > { %v300_v16 = vpop.f32.mrb[0].mxu0 }
  0xea   : > { %v301_v17 = vadd.f32 %v481_v15, %v300_v16  ;;  %v522_v18 = vpop.f32.mrb[1].mxu0 }
  0xeb   : > { %v303_v19 = vpop.f32.mrb[2].mxu0 }
  0xec   : > { %v306_v20 = vmax.f32 %v301_v17, 0.0  ;;  %v523_v21 = vpop.f32.mrb[3].mxu0 }
  0xee   : > { %v307_v22 = vpack.c.bf16 %v306_v20, %v306_v20 }
  0xf0   : > { %541 = vmatmul.mubr.bf16.vlgmr.msra.gmra.mrb[0].mxu1 %v307_v22 }
 0x1c3   : > { %v413_v24 = vpop.f32.mrb[0].mxu1 }
 0x1c4   : > { %v414_v25 = vadd.f32 %v487_v23, %v413_v24  ;;  %v542_v26 = vpop.f32.mrb[1].mxu1 }
 0x1c5   : > { %v416_v27 = vpop.f32.mrb[2].mxu1 }
 0x1c6   : > { %420 = vst.msk [vmem:[%s219_s7] sm:$0xff] %vm419_vm2, %v414_v25  ;;  %v543_v28 = vpop.f32.mrb[3].mxu1 }
 0x1c7 PF: > { %s15_s18 = sadd.s32 1, %s572_s18  }
 0x1c8   : > { %p12_p4 = scmp.ge.s32.totalorder %s15_s18, 4  }
 0x1ca   :  { %14 = sbr.rel (!%p12_p4) target bundleno = 1 (0x1), region = 70 }

</bundles_post_ra>
